<compile_context>
chip_gen: v6e
topology: v6e:2x2x1
jax: 0.10.0
libtpu: 0.0.40
codegen_flags: <defaults>
</compile_context>

<pallas_src>
import functools

import jax
import jax.numpy as jnp
from jax.experimental import pallas as pl
from jax.experimental.pallas import tpu as pltpu


def _mlp_kernel(x_ref, w1_ref, b1_ref, w2_ref, b2_ref, w3_ref, b3_ref, o_ref):
    # layer 1: Linear + ReLU   (bf16 operands, f32 accumulate)
    h = jnp.dot(x_ref[...], w1_ref[...], preferred_element_type=jnp.float32)
    h = jnp.maximum(h + b1_ref[...], 0.0)
    # layer 2: Linear + ReLU
    h = jnp.dot(h.astype(w2_ref.dtype), w2_ref[...],
                preferred_element_type=jnp.float32)
    h = jnp.maximum(h + b2_ref[...], 0.0)
    # output layer: Linear, no activation
    o = jnp.dot(h.astype(w3_ref.dtype), w3_ref[...],
                preferred_element_type=jnp.float32)
    o_ref[...] = (o + b3_ref[...]).astype(o_ref.dtype)


@functools.partial(jax.jit, static_argnames=("block_b",))
def surrogate_forward(x, w1, b1, w2, b2, w3, b3, *, block_b=256):
    """Pallas TPU forward of Surrogate (3-layer MLP, ReLU).

    x : [B, in_dim] f32
    w1: [in_dim, n_hidden], b1: [1, n_hidden]
    w2: [n_hidden, n_hidden], b2: [1, n_hidden]
    w3: [n_hidden, out_dim],  b3: [1, out_dim]
    returns [B, out_dim] f32
    """
    B, in_dim = x.shape
    n_hidden = w1.shape[1]
    out_dim = w3.shape[1]

    # Pack factor: fold `pack` batch rows into one lane-row so the output
    # (and intermediates) are >=128 lanes wide.  pack==1 degenerates cleanly.
    pack = 128 // out_dim if (0 < out_dim < 128 and 128 % out_dim == 0) else 1

    block_b = min(block_b, B)
    if block_b % pack != 0 or B % pack != 0:
        pack = 1
    assert B % block_b == 0, "batch must be a multiple of block_b"

    # v7x has two TensorCores: make sure the 'parallel' grid axis has >=2 steps.
    if B // block_b < 2:
        half = block_b // 2
        if half >= 8 * pack and half % pack == 0 and B % half == 0:
            block_b = half

    bm = block_b // pack          # packed rows per grid step
    Bp = B // pack                # packed batch
    assert bm % 8 == 0 or bm == Bp, "packed batch tile must be a sublane multiple"

    di, dh, do = pack * in_dim, pack * n_hidden, pack * out_dim

    cdtype = jnp.bfloat16
    eye = jnp.eye(pack, dtype=jnp.float32)
    # NB: for repeated inference, precompute these block-diagonal bf16 weights
    # once outside; at n_hidden=64 they total well under 1 MiB.
    xk = x.reshape(Bp, di).astype(cdtype)
    w1k = jnp.kron(eye, w1).astype(cdtype)
    w2k = jnp.kron(eye, w2).astype(cdtype)
    w3k = jnp.kron(eye, w3).astype(cdtype)
    b1k = jnp.tile(b1.reshape(1, n_hidden), (1, pack)).astype(jnp.float32)
    b2k = jnp.tile(b2.reshape(1, n_hidden), (1, pack)).astype(jnp.float32)
    b3k = jnp.tile(b3.reshape(1, out_dim), (1, pack)).astype(jnp.float32)

    grid = (Bp // bm,)
    resident = lambda shape: pl.BlockSpec(shape, lambda i: (0, 0))

    flops = 2 * Bp * (di * dh + dh * dh + dh * do)
    bytes_accessed = (xk.size * 2
                      + (w1k.size + w2k.size + w3k.size) * 2
                      + (b1k.size + b2k.size + b3k.size) * 4
                      + Bp * do * 4)

    out_packed = pl.pallas_call(
        _mlp_kernel,
        out_shape=jax.ShapeDtypeStruct((Bp, do), jnp.float32),
        grid_spec=pltpu.PrefetchScalarGridSpec(
            num_scalar_prefetch=0,
            grid=grid,
            in_specs=[
                pl.BlockSpec((bm, di), lambda i: (i, 0)),   # packed x tile
                resident((di, dh)),                         # w1 (block-diag)
                resident((1, dh)),                          # b1
                resident((dh, dh)),                         # w2 (block-diag)
                resident((1, dh)),                          # b2
                resident((dh, do)),                         # w3 (block-diag)
                resident((1, do)),                          # b3
            ],
            out_specs=pl.BlockSpec((bm, do), lambda i: (i, 0)),
        ),
        compiler_params=pltpu.CompilerParams(
            dimension_semantics=("parallel",),
        ),
        cost_estimate=pl.CostEstimate(
            flops=flops, transcendentals=0, bytes_accessed=bytes_accessed),
    )(xk, w1k, b1k, w2k, b2k, w3k, b3k)

    # Row-major view back to [B, out_dim] (free; layout is identical in HBM).
    return out_packed.reshape(B, out_dim)


def init_linear_params(key, fan_in, fan_out):
    """nn.Linear-style init (uniform ±1/sqrt(fan_in)); W stored as [in, out]."""
    kw, kb = jax.random.split(key)
    bound = 1.0 / jnp.sqrt(fan_in)
    w = jax.random.uniform(kw, (fan_in, fan_out), jnp.float32, -bound, bound)
    b = jax.random.uniform(kb, (1, fan_out), jnp.float32, -bound, bound)
    return w, b


if __name__ == "__main__":
    # Surrogate(in_dim=32, out_dim=16, n_hidden=64); batch sized so the grid
    # has 2 parallel steps at the default block_b=256.
    batch, in_dim, n_hidden, out_dim = 512, 32, 64, 16

    key = jax.random.PRNGKey(0)
    kx, k1, k2, k3 = jax.random.split(key, 4)

    x = jax.random.normal(kx, (batch, in_dim), jnp.float32)
    w1, b1 = init_linear_params(k1, in_dim, n_hidden)
    w2, b2 = init_linear_params(k2, n_hidden, n_hidden)
    w3, b3 = init_linear_params(k3, n_hidden, out_dim)

    out = surrogate_forward(x, w1, b1, w2, b2, w3, b3)
    out = jax.block_until_ready(out)
    assert out.shape == (batch, out_dim)

    # Pure-JAX reference mirroring the kernel's bf16-operand / f32-accumulate
    # numerics.
    f = lambda a: a.astype(jnp.bfloat16).astype(jnp.float32)
    h = jnp.maximum(f(x) @ f(w1) + b1, 0.0)
    h = jnp.maximum(f(h) @ f(w2) + b2, 0.0)
    ref = f(h) @ f(w3) + b3

    err = float(jnp.max(jnp.abs(out - ref)))
    assert jnp.allclose(out, ref, atol=2e-3, rtol=2e-3), err

    print("KERNEL_OK")
</pallas_src>

<mosaic_0001>
module attributes {stable_mosaic.version = 11 : i64} {
  func.func @_mlp_kernel(%arg0: i32, %arg1: memref<32x256xbf16, #tpu.memory_space<vmem>>, %arg2: memref<256x512xbf16, #tpu.memory_space<vmem>>, %arg3: memref<1x512xf32, #tpu.memory_space<vmem>>, %arg4: memref<512x512xbf16, #tpu.memory_space<vmem>>, %arg5: memref<1x512xf32, #tpu.memory_space<vmem>>, %arg6: memref<512x128xbf16, #tpu.memory_space<vmem>>, %arg7: memref<1x128xf32, #tpu.memory_space<vmem>>, %arg8: memref<32x128xf32, #tpu.memory_space<vmem>>) attributes {dimension_semantics = [#tpu.dimension_semantics<parallel>], iteration_bounds = array<i64: 2>, scalar_prefetch = 0 : i64, scratch_operands = 0 : i64, tpu.core_type = #tpu.core_type<tc>, window_params = [{transform_indices = @transform_0, window_bounds = array<i64: 32, 256>}, {pipeline_mode = #tpu.pipeline_mode<synchronous>, transform_indices = @transform_1, window_bounds = array<i64: 256, 512>}, {pipeline_mode = #tpu.pipeline_mode<synchronous>, transform_indices = @transform_2, window_bounds = array<i64: 1, 512>}, {pipeline_mode = #tpu.pipeline_mode<synchronous>, transform_indices = @transform_3, window_bounds = array<i64: 512, 512>}, {pipeline_mode = #tpu.pipeline_mode<synchronous>, transform_indices = @transform_4, window_bounds = array<i64: 1, 512>}, {pipeline_mode = #tpu.pipeline_mode<synchronous>, transform_indices = @transform_5, window_bounds = array<i64: 512, 128>}, {pipeline_mode = #tpu.pipeline_mode<synchronous>, transform_indices = @transform_6, window_bounds = array<i64: 1, 128>}, {transform_indices = @transform_7, window_bounds = array<i64: 32, 128>}]} {
    %c0 = arith.constant 0 : index
    %c0_0 = arith.constant 0 : index
    %0 = vector.load %arg1[%c0, %c0_0] : memref<32x256xbf16, #tpu.memory_space<vmem>>, vector<32x256xbf16>
    %c0_1 = arith.constant 0 : index
    %c0_2 = arith.constant 0 : index
    %1 = vector.load %arg2[%c0_1, %c0_2] : memref<256x512xbf16, #tpu.memory_space<vmem>>, vector<256x512xbf16>
    %cst = arith.constant dense<0.000000e+00> : vector<32x512xf32>
    %2 = tpu.matmul %0, %1, %cst {dimension_numbers = #tpu.dot_dimension_numbers<[1], [0], [0], [1], [0, 0, 1, 1], [], []>} : vector<32x256xbf16>, vector<256x512xbf16>, vector<32x512xf32> -> vector<32x512xf32>
    %c0_3 = arith.constant 0 : index
    %c0_4 = arith.constant 0 : index
    %3 = vector.load %arg3[%c0_3, %c0_4] : memref<1x512xf32, #tpu.memory_space<vmem>>, vector<1x512xf32>
    %4 = vector.broadcast %3 : vector<1x512xf32> to vector<32x512xf32>
    %5 = arith.addf %2, %4 : vector<32x512xf32>
    %cst_5 = arith.constant 0.000000e+00 : f32
    %6 = vector.broadcast %cst_5 : f32 to vector<32x512xf32>
    %7 = arith.maximumf %5, %6 : vector<32x512xf32>
    %8 = arith.truncf %7 : vector<32x512xf32> to vector<32x512xbf16>
    %c0_6 = arith.constant 0 : index
    %c0_7 = arith.constant 0 : index
    %9 = vector.load %arg4[%c0_6, %c0_7] : memref<512x512xbf16, #tpu.memory_space<vmem>>, vector<512x512xbf16>
    %cst_8 = arith.constant dense<0.000000e+00> : vector<32x512xf32>
    %10 = tpu.matmul %8, %9, %cst_8 {dimension_numbers = #tpu.dot_dimension_numbers<[1], [0], [0], [1], [0, 0, 1, 1], [], []>} : vector<32x512xbf16>, vector<512x512xbf16>, vector<32x512xf32> -> vector<32x512xf32>
    %c0_9 = arith.constant 0 : index
    %c0_10 = arith.constant 0 : index
    %11 = vector.load %arg5[%c0_9, %c0_10] : memref<1x512xf32, #tpu.memory_space<vmem>>, vector<1x512xf32>
    %12 = vector.broadcast %11 : vector<1x512xf32> to vector<32x512xf32>
    %13 = arith.addf %10, %12 : vector<32x512xf32>
    %cst_11 = arith.constant 0.000000e+00 : f32
    %14 = vector.broadcast %cst_11 : f32 to vector<32x512xf32>
    %15 = arith.maximumf %13, %14 : vector<32x512xf32>
    %16 = arith.truncf %15 : vector<32x512xf32> to vector<32x512xbf16>
    %c0_12 = arith.constant 0 : index
    %c0_13 = arith.constant 0 : index
    %17 = vector.load %arg6[%c0_12, %c0_13] : memref<512x128xbf16, #tpu.memory_space<vmem>>, vector<512x128xbf16>
    %cst_14 = arith.constant dense<0.000000e+00> : vector<32x128xf32>
    %18 = tpu.matmul %16, %17, %cst_14 {dimension_numbers = #tpu.dot_dimension_numbers<[1], [0], [0], [1], [0, 0, 1, 1], [], []>} : vector<32x512xbf16>, vector<512x128xbf16>, vector<32x128xf32> -> vector<32x128xf32>
    %c0_15 = arith.constant 0 : index
    %c0_16 = arith.constant 0 : index
    %19 = vector.load %arg7[%c0_15, %c0_16] : memref<1x128xf32, #tpu.memory_space<vmem>>, vector<1x128xf32>
    %20 = vector.broadcast %19 : vector<1x128xf32> to vector<32x128xf32>
    %21 = arith.addf %18, %20 : vector<32x128xf32>
    %c0_17 = arith.constant 0 : index
    %c0_18 = arith.constant 0 : index
    %22 = vector.load %arg8[%c0_17, %c0_18] : memref<32x128xf32, #tpu.memory_space<vmem>>, vector<32x128xf32>
    tpu.vector_store %arg8[%c0_17, %c0_18], %21 {strides = array<i32>} : memref<32x128xf32, #tpu.memory_space<vmem>>, vector<32x128xf32>,
    return
  }
  func.func @transform_0(%arg0: i32) -> (i32, i32) {
    %c0_i32 = arith.constant 0 : i32
    %c0_i32_0 = arith.constant 0 : i32
    return %arg0, %c0_i32 : i32, i32
  }
  func.func @transform_1(%arg0: i32) -> (i32, i32) {
    %c0_i32 = arith.constant 0 : i32
    %c0_i32_0 = arith.constant 0 : i32
    %c0_i32_1 = arith.constant 0 : i32
    return %c0_i32, %c0_i32_0 : i32, i32
  }
  func.func @transform_2(%arg0: i32) -> (i32, i32) {
    %c0_i32 = arith.constant 0 : i32
    %c0_i32_0 = arith.constant 0 : i32
    %c0_i32_1 = arith.constant 0 : i32
    return %c0_i32, %c0_i32_0 : i32, i32
  }
  func.func @transform_3(%arg0: i32) -> (i32, i32) {
    %c0_i32 = arith.constant 0 : i32
    %c0_i32_0 = arith.constant 0 : i32
    %c0_i32_1 = arith.constant 0 : i32
    return %c0_i32, %c0_i32_0 : i32, i32
  }
  func.func @transform_4(%arg0: i32) -> (i32, i32) {
    %c0_i32 = arith.constant 0 : i32
    %c0_i32_0 = arith.constant 0 : i32
    %c0_i32_1 = arith.constant 0 : i32
    return %c0_i32, %c0_i32_0 : i32, i32
  }
  func.func @transform_5(%arg0: i32) -> (i32, i32) {
    %c0_i32 = arith.constant 0 : i32
    %c0_i32_0 = arith.constant 0 : i32
    %c0_i32_1 = arith.constant 0 : i32
    return %c0_i32, %c0_i32_0 : i32, i32
  }
  func.func @transform_6(%arg0: i32) -> (i32, i32) {
    %c0_i32 = arith.constant 0 : i32
    %c0_i32_0 = arith.constant 0 : i32
    %c0_i32_1 = arith.constant 0 : i32
    return %c0_i32, %c0_i32_0 : i32, i32
  }
  func.func @transform_7(%arg0: i32) -> (i32, i32) {
    %c0_i32 = arith.constant 0 : i32
    %c0_i32_0 = arith.constant 0 : i32
    return %arg0, %c0_i32 : i32, i32
  }
}

</mosaic_0001>

<bundles_post_ra>
// kernel: surrogate_forward.1
= control target key start
LH: loop header
LB: loop body
LE: loop exit
PB: predicated region body
PF: predicated region fallthrough
CT: control target
= control target key end

     0   :  { %s2973_s24 = smov 0   ;;  %s3732_s0 = inlined_call_operand.vmem [shape: bf16[64,256], index: 0, kind: input, shape index: {}]   ;;  %s3733_s1 = inlined_call_operand.vmem [shape: bf16[256,512], index: 1, kind: input, shape index: {}]   ;;  %s3734_s2 = inlined_call_operand.vmem [shape: f32[1,512], index: 2, kind: input, shape index: {}]   ;;  %s3735_s3 = inlined_call_operand.vmem [shape: bf16[512,512], index: 3, kind: input, shape index: {}]   ;;  %s3736_s4 = inlined_call_operand.vmem [shape: f32[1,512], index: 4, kind: input, shape index: {}]   ;;  %s3737_s5 = inlined_call_operand.vmem [shape: bf16[512,128], index: 5, kind: input, shape index: {}]   ;;  %s3738_s6 = inlined_call_operand.vmem [shape: f32[1,128], index: 6, kind: input, shape index: {}]   ;;  %s3739_s7 = inlined_call_operand.vmem [shape: f32[64,128], index: 7, kind: output, shape index: {}]  }
   0x1 LB: > { %s2293_s25 = sadd.s32 4294967295, %s2931_s24   ;;  %p2297_p0 = scmp.ge.s32.totalorder %s2931_s24, 1  ;;  %s2931_s24 = sphi %s2973_s24, %s17_s24  }
   0x2   : > { %p239_p1 = scmp.lt.s32.totalorder %s2931_s24, 3 }
   0x4   : > { %p240_p2 = pnand %p2297_p0, %p239_p1 }
   0x5   : > { %s2298_s21 = sshll.u32 (!%p240_p2), %s2293_s25, 2 }
   0x6   : > { %243 = sbr.rel (%p240_p2) target bundleno = 766 (0x2fe), region = 48  ;;  %p273_p3 = scmp.lt.s32.totalorder (!%p240_p2), %s2298_s21, 7 }
   0xb   : > { %v2599_v0 = vld [vmem:[%s3733_s1 + $0xe4] ss:$16 sps:$4 sm:$0xff]   ;;  %v2601_v1 = vld [vmem:[%s3733_s1 + $0xec] ss:$16 sps:$4 sm:$0xff]   ;;  %v2603_v2 = vld [vmem:[%s3733_s1 + $0xe0] ss:$16 sps:$4 sm:$0xff]  }
   0xc   : > { %716 = vmatprep.subr.bf16.mxu0 %v2599_v0  ;;  %v2604_v3 = vld [vmem:[%s3733_s1 + $0xe8] ss:$16 sps:$4 sm:$0xff]   ;;  %769 = vmatprep.subr.bf16.mxu1 %v2601_v1  ;;  %v2605_v4 = vld [vmem:[%s3733_s1 + $0xc4] ss:$16 sps:$4 sm:$0xff]   ;;  %v2607_v5 = vld [vmem:[%s3733_s1 + $0xcc] ss:$16 sps:$4 sm:$0xff]  }
   0xd   : > { %717 = vmatpush1.bf16.msra.mxu0 %v2603_v2  ;;  %770 = vmatpush1.bf16.msra.mxu1 %v2604_v3  ;;  %v2609_v6 = vld [vmem:[%s3733_s1 + $0xc0] ss:$16 sps:$4 sm:$0xff]   ;;  %v2610_v7 = vld [vmem:[%s3733_s1 + $0xc8] ss:$16 sps:$4 sm:$0xff]   ;;  %v2611_v8 = vld [vmem:[%s3733_s1 + $0xa4] ss:$16 sps:$4 sm:$0xff]  }
   0xe   : > { %718 = vmatprep.subr.bf16.mxu0 %v2605_v4  ;;  %771 = vmatprep.subr.bf16.mxu1 %v2607_v5  ;;  %v2613_v9 = vld [vmem:[%s3733_s1 + $0xac] ss:$16 sps:$4 sm:$0xff]   ;;  %v2615_v10 = vld [vmem:[%s3733_s1 + $0xa0] ss:$16 sps:$4 sm:$0xff]   ;;  %v2616_v11 = vld [vmem:[%s3733_s1 + $0xa8] ss:$16 sps:$4 sm:$0xff]  }
   0xf   : > { %v2617_v12 = vld [vmem:[%s3733_s1 + $0x84] ss:$16 sps:$4 sm:$0xff]   ;;  %v2619_v13 = vld [vmem:[%s3733_s1 + $0x8c] ss:$16 sps:$4 sm:$0xff]   ;;  %v2621_v14 = vld [vmem:[%s3733_s1 + $0x80] ss:$16 sps:$4 sm:$0xff]  }
  0x10   : > { %v2622_v15 = vld [vmem:[%s3733_s1 + $0x88] ss:$16 sps:$4 sm:$0xff]   ;;  %v2623_v16 = vld [vmem:[%s3733_s1 + $0x64] ss:$16 sps:$4 sm:$0xff]   ;;  %v2625_v17 = vld [vmem:[%s3733_s1 + $0x6c] ss:$16 sps:$4 sm:$0xff]  }
  0x11   : > { %719 = vmatpush1.bf16.msra.mxu0 %v2609_v6  ;;  %772 = vmatpush1.bf16.msra.mxu1 %v2610_v7  ;;  %v2627_v18 = vld [vmem:[%s3733_s1 + $0x60] ss:$16 sps:$4 sm:$0xff]   ;;  %v2628_v19 = vld [vmem:[%s3733_s1 + $0x68] ss:$16 sps:$4 sm:$0xff]   ;;  %v2629_v20 = vld [vmem:[%s3733_s1 + $0x44] ss:$16 sps:$4 sm:$0xff]  }
  0x12   : > { %720 = vmatprep.subr.bf16.mxu0 %v2611_v8  ;;  %773 = vmatprep.subr.bf16.mxu1 %v2613_v9  ;;  %v2631_v21 = vld [vmem:[%s3733_s1 + $0x4c] ss:$16 sps:$4 sm:$0xff]   ;;  %v2633_v22 = vld [vmem:[%s3733_s1 + $0x40] ss:$16 sps:$4 sm:$0xff]   ;;  %v2634_v23 = vld [vmem:[%s3733_s1 + $0x48] ss:$16 sps:$4 sm:$0xff]  }
  0x13   : > { %v2635_v24 = vld [vmem:[%s3733_s1 + $0x24] ss:$16 sps:$4 sm:$0xff]   ;;  %v2637_v25 = vld [vmem:[%s3733_s1 + $0x2c] ss:$16 sps:$4 sm:$0xff]   ;;  %v2639_v26 = vld [vmem:[%s3733_s1 + $0x20] ss:$16 sps:$4 sm:$0xff]  }
  0x14   : > { %v2640_v27 = vld [vmem:[%s3733_s1 + $0x28] ss:$16 sps:$4 sm:$0xff]   ;;  %v2641_v28 = vld [vmem:[%s3733_s1 + $0x4] ss:$16 sps:$4 sm:$0xff]   ;;  %v2643_v29 = vld [vmem:[%s3733_s1 + $0xc] ss:$16 sps:$4 sm:$0xff]  }
  0x15   : > { %721 = vmatpush1.bf16.msra.mxu0 %v2615_v10  ;;  %774 = vmatpush1.bf16.msra.mxu1 %v2616_v11  ;;  %v2645_v30 = vld [vmem:[%s3733_s1] ss:$16 sps:$4 sm:$0xff]   ;;  %v2646_v31 = vld [vmem:[%s3733_s1 + $0x8] ss:$16 sps:$4 sm:$0xff]   ;;  %v2647_v32 = vld [vmem:[%s3733_s1 + $0x1e4] ss:$16 sps:$4 sm:$0xff]  }
  0x16   : > { %722 = vmatprep.subr.bf16.mxu0 %v2617_v12  ;;  %775 = vmatprep.subr.bf16.mxu1 %v2619_v13  ;;  %v2649_v33 = vld [vmem:[%s3733_s1 + $0x1ec] ss:$16 sps:$4 sm:$0xff]   ;;  %v2651_v34 = vld [vmem:[%s3733_s1 + $0x1e0] ss:$16 sps:$4 sm:$0xff]   ;;  %v2652_v35 = vld [vmem:[%s3733_s1 + $0x1e8] ss:$16 sps:$4 sm:$0xff]  }
  0x17   : > { %v2653_v36 = vld [vmem:[%s3733_s1 + $0x1c4] ss:$16 sps:$4 sm:$0xff]   ;;  %v2655_v37 = vld [vmem:[%s3733_s1 + $0x1cc] ss:$16 sps:$4 sm:$0xff]   ;;  %s3741_s21 = smov (!%p273_p3, %s2298_s21), 7 }
  0x18   : > { %v2657_v38 = vld [vmem:[%s3733_s1 + $0x1c0] ss:$16 sps:$4 sm:$0xff]   ;;  %v2658_v39 = vld [vmem:[%s3733_s1 + $0x1c8] ss:$16 sps:$4 sm:$0xff]   ;;  %v2659_v40 = vld [vmem:[%s3733_s1 + $0x1a4] ss:$16 sps:$4 sm:$0xff]  }
  0x19   : > { %723 = vmatpush1.bf16.msra.mxu0 %v2621_v14  ;;  %776 = vmatpush1.bf16.msra.mxu1 %v2622_v15  ;;  %v2661_v41 = vld [vmem:[%s3733_s1 + $0x1ac] ss:$16 sps:$4 sm:$0xff]   ;;  %s2534_s27 = sshll.u32 %s3741_s21, 3  ;;  %v2663_v42 = vld [vmem:[%s3733_s1 + $0x1a0] ss:$16 sps:$4 sm:$0xff]  }
  0x1a   : > { %724 = vmatprep.subr.bf16.mxu0 %v2623_v16  ;;  %777 = vmatprep.subr.bf16.mxu1 %v2625_v17  ;;  %v2664_v43 = vld [vmem:[%s3733_s1 + $0x1a8] ss:$16 sps:$4 sm:$0xff]   ;;  %v2665_v44 = vld [vmem:[%s3733_s1 + $0x184] ss:$16 sps:$4 sm:$0xff]   ;;  %s3126_s12 = scalar_lea.vmem %s3732_s0, %s2534_s27  ;;  %v2667_v45 = vld [vmem:[%s3733_s1 + $0x18c] ss:$16 sps:$4 sm:$0xff]  }
  0x1b   : > { %v2669_v46 = vld [vmem:[%s3733_s1 + $0x180] ss:$16 sps:$4 sm:$0xff]   ;;  %v2670_v47 = vld [vmem:[%s3733_s1 + $0x188] ss:$16 sps:$4 sm:$0xff]   ;;  %v2697_v48 = vld [vmem:[%s3126_s12 + $0x4] ss:$8 sps:$4 sm:$0xff]  }
  0x1c   : > { %v2671_v49 = vld [vmem:[%s3733_s1 + $0x164] ss:$16 sps:$4 sm:$0xff]   ;;  %v2673_v50 = vld [vmem:[%s3733_s1 + $0x16c] ss:$16 sps:$4 sm:$0xff]   ;;  %748 = vmatprep.mubr.bf16.mxu0 %v2697_v48  ;;  %801 = vmatprep.mubr.bf16.mxu1 %v2697_v48  ;;  %v2675_v51 = vld [vmem:[%s3733_s1 + $0x160] ss:$16 sps:$4 sm:$0xff]  }
  0x1d   : > { %725 = vmatpush1.bf16.msra.mxu0 %v2627_v18  ;;  %778 = vmatpush1.bf16.msra.mxu1 %v2628_v19  ;;  %v2676_v52 = vld [vmem:[%s3733_s1 + $0x168] ss:$16 sps:$4 sm:$0xff]   ;;  %v2677_v53 = vld [vmem:[%s3733_s1 + $0x144] ss:$16 sps:$4 sm:$0xff]   ;;  %v2679_v54 = vld [vmem:[%s3733_s1 + $0x14c] ss:$16 sps:$4 sm:$0xff]  }
  0x1e   : > { %726 = vmatprep.subr.bf16.mxu0 %v2629_v20  ;;  %779 = vmatprep.subr.bf16.mxu1 %v2631_v21  ;;  %v2681_v55 = vld [vmem:[%s3733_s1 + $0x140] ss:$16 sps:$4 sm:$0xff]   ;;  %v2682_v56 = vld [vmem:[%s3733_s1 + $0x148] ss:$16 sps:$4 sm:$0xff]   ;;  %v2683_v57 = vld [vmem:[%s3733_s1 + $0x124] ss:$16 sps:$4 sm:$0xff]  }
  0x1f   : > { %v2685_v58 = vld [vmem:[%s3733_s1 + $0x12c] ss:$16 sps:$4 sm:$0xff]   ;;  %v2687_v59 = vld [vmem:[%s3733_s1 + $0x120] ss:$16 sps:$4 sm:$0xff]   ;;  %v2688_v60 = vld [vmem:[%s3733_s1 + $0x128] ss:$16 sps:$4 sm:$0xff]  }
  0x20   : > { %v2689_v61 = vld [vmem:[%s3733_s1 + $0x104] ss:$16 sps:$4 sm:$0xff]   ;;  %v2691_v62 = vld [vmem:[%s3733_s1 + $0x10c] ss:$16 sps:$4 sm:$0xff]   ;;  %v2693_v63 = vld [vmem:[%s3733_s1 + $0x100] ss:$16 sps:$4 sm:$0xff]  }
  0x21   : > { %727 = vmatpush1.bf16.msra.mxu0 %v2633_v22  ;;  %780 = vmatpush1.bf16.msra.mxu1 %v2634_v23  ;;  %v2694_v0 = vld [vmem:[%s3733_s1 + $0x108] ss:$16 sps:$4 sm:$0xff]   ;;  %v2703_v1 = vld [vmem:[%s3735_s3 + $0xe4] ss:$16 sps:$4 sm:$0xff]   ;;  %v2701_v5 = vld [vmem:[%s3735_s3 + $0xe0] ss:$16 sps:$4 sm:$0xff]  }
  0x22   : > { %728 = vmatprep.subr.bf16.mxu0 %v2635_v24  ;;  %781 = vmatprep.subr.bf16.mxu1 %v2637_v25  ;;  %v2706_v2 = vld [vmem:[%s3735_s3 + $0x2e4] ss:$16 sps:$4 sm:$0xff]   ;;  %v2695_v3 = vld [vmem:[%s3126_s12] ss:$8 sps:$4 sm:$0xff]   ;;  %v2700_v13 = vld [vmem:[%s3126_s12 + $0x10] ss:$8 sps:$4 sm:$0xff]  }
  0x23   : > { %v2698_v4 = vld [vmem:[%s3126_s12 + $0x14] ss:$8 sps:$4 sm:$0xff]   ;;  %v2704_v6 = vld [vmem:[%s3735_s3 + $0x2e0] ss:$16 sps:$4 sm:$0xff]   ;;  %s283_s12 = scalar_lea.vmem %s3739_s7, %s2534_s27 }
  0x24   : > { %v2709_v7 = vld [vmem:[%s3735_s3 + $0xc4] ss:$16 sps:$4 sm:$0xff]   ;;  %v2707_v9 = vld [vmem:[%s3735_s3 + $0xc0] ss:$16 sps:$4 sm:$0xff]  }
  0x25   : > { %729 = vmatpush1.bf16.msra.mxu0 %v2639_v26  ;;  %782 = vmatpush1.bf16.msra.mxu1 %v2640_v27  ;;  %v2712_v8 = vld [vmem:[%s3735_s3 + $0x2c4] ss:$16 sps:$4 sm:$0xff]   ;;  %v2710_v10 = vld [vmem:[%s3735_s3 + $0x2c0] ss:$16 sps:$4 sm:$0xff]  }
  0x26   : > { %730 = vmatprep.subr.bf16.mxu0 %v2641_v28  ;;  %783 = vmatprep.subr.bf16.mxu1 %v2643_v29  ;;  %v2715_v11 = vld [vmem:[%s3735_s3 + $0xa4] ss:$16 sps:$4 sm:$0xff]   ;;  %v2713_v14 = vld [vmem:[%s3735_s3 + $0xa0] ss:$16 sps:$4 sm:$0xff]  }
  0x27   : > { %v2718_v12 = vld [vmem:[%s3735_s3 + $0x2a4] ss:$16 sps:$4 sm:$0xff]   ;;  %v2716_v15 = vld [vmem:[%s3735_s3 + $0x2a0] ss:$16 sps:$4 sm:$0xff]  }
  0x28   : > { %v2721_v16 = vld [vmem:[%s3735_s3 + $0x84] ss:$16 sps:$4 sm:$0xff]   ;;  %v2719_v18 = vld [vmem:[%s3735_s3 + $0x80] ss:$16 sps:$4 sm:$0xff]  }
  0x29   : > { %731 = vmatpush1.bf16.msra.mxu0 %v2645_v30  ;;  %784 = vmatpush1.bf16.msra.mxu1 %v2646_v31  ;;  %v2724_v17 = vld [vmem:[%s3735_s3 + $0x284] ss:$16 sps:$4 sm:$0xff]   ;;  %v2722_v19 = vld [vmem:[%s3735_s3 + $0x280] ss:$16 sps:$4 sm:$0xff]  }
  0x2a   : > { %732 = vmatprep.subr.bf16.mxu0 %v2647_v32  ;;  %785 = vmatprep.subr.bf16.mxu1 %v2649_v33  ;;  %v2727_v20 = vld [vmem:[%s3735_s3 + $0x64] ss:$16 sps:$4 sm:$0xff]   ;;  %v2725_v22 = vld [vmem:[%s3735_s3 + $0x60] ss:$16 sps:$4 sm:$0xff]  }
  0x2b   : > { %v2730_v21 = vld [vmem:[%s3735_s3 + $0x264] ss:$16 sps:$4 sm:$0xff]   ;;  %v2728_v23 = vld [vmem:[%s3735_s3 + $0x260] ss:$16 sps:$4 sm:$0xff]  }
  0x2c   : > { %v2733_v24 = vld [vmem:[%s3735_s3 + $0x44] ss:$16 sps:$4 sm:$0xff]   ;;  %v2731_v26 = vld [vmem:[%s3735_s3 + $0x40] ss:$16 sps:$4 sm:$0xff]  }
  0x2d   : > { %733 = vmatpush2.bf16.msra.mxu0 %v2651_v34  ;;  %786 = vmatpush2.bf16.msra.mxu1 %v2652_v35  ;;  %v2736_v25 = vld [vmem:[%s3735_s3 + $0x244] ss:$16 sps:$4 sm:$0xff]   ;;  %v2734_v27 = vld [vmem:[%s3735_s3 + $0x240] ss:$16 sps:$4 sm:$0xff]  }
  0x2e   : > { %734 = vmatprep.subr.bf16.mxu0 %v2653_v36  ;;  %787 = vmatprep.subr.bf16.mxu1 %v2655_v37  ;;  %v2739_v28 = vld [vmem:[%s3735_s3 + $0x24] ss:$16 sps:$4 sm:$0xff]   ;;  %v2737_v30 = vld [vmem:[%s3735_s3 + $0x20] ss:$16 sps:$4 sm:$0xff]  }
  0x2f   : > { %v2742_v29 = vld [vmem:[%s3735_s3 + $0x224] ss:$16 sps:$4 sm:$0xff]   ;;  %v2740_v31 = vld [vmem:[%s3735_s3 + $0x220] ss:$16 sps:$4 sm:$0xff]  }
  0x30   : > { %v2745_v32 = vld [vmem:[%s3735_s3 + $0x4] ss:$16 sps:$4 sm:$0xff]   ;;  %v2743_v34 = vld [vmem:[%s3735_s3] ss:$16 sps:$4 sm:$0xff]  }
  0x31   : > { %735 = vmatpush2.bf16.msra.mxu0 %v2657_v38  ;;  %788 = vmatpush2.bf16.msra.mxu1 %v2658_v39  ;;  %v2748_v33 = vld [vmem:[%s3735_s3 + $0x204] ss:$16 sps:$4 sm:$0xff]   ;;  %v2746_v35 = vld [vmem:[%s3735_s3 + $0x200] ss:$16 sps:$4 sm:$0xff]  }
  0x32   : > { %736 = vmatprep.subr.bf16.mxu0 %v2659_v40  ;;  %789 = vmatprep.subr.bf16.mxu1 %v2661_v41  ;;  %v2751_v36 = vld [vmem:[%s3735_s3 + $0x1e4] ss:$16 sps:$4 sm:$0xff]   ;;  %v2749_v38 = vld [vmem:[%s3735_s3 + $0x1e0] ss:$16 sps:$4 sm:$0xff]  }
  0x33   : > { %v2754_v37 = vld [vmem:[%s3735_s3 + $0x3e4] ss:$16 sps:$4 sm:$0xff]   ;;  %v2752_v39 = vld [vmem:[%s3735_s3 + $0x3e0] ss:$16 sps:$4 sm:$0xff]  }
  0x34   : > { %v2757_v40 = vld [vmem:[%s3735_s3 + $0x1c4] ss:$16 sps:$4 sm:$0xff]  }
  0x35   : > { %737 = vmatpush2.bf16.msra.mxu0 %v2663_v42  ;;  %790 = vmatpush2.bf16.msra.mxu1 %v2664_v43  ;;  %v2760_v41 = vld [vmem:[%s3735_s3 + $0x3c4] ss:$16 sps:$4 sm:$0xff]   ;;  %v2755_v42 = vld [vmem:[%s3735_s3 + $0x1c0] ss:$16 sps:$4 sm:$0xff]  }
  0x36   : > { %738 = vmatprep.subr.bf16.mxu0 %v2665_v44  ;;  %791 = vmatprep.subr.bf16.mxu1 %v2667_v45  ;;  %v2758_v43 = vld [vmem:[%s3735_s3 + $0x3c0] ss:$16 sps:$4 sm:$0xff]   ;;  %v2763_v44 = vld [vmem:[%s3735_s3 + $0x1a4] ss:$16 sps:$4 sm:$0xff]  }
  0x37   : > { %v2766_v45 = vld [vmem:[%s3735_s3 + $0x3a4] ss:$16 sps:$4 sm:$0xff]  }
  0x38   : > { %v2769_v48 = vld [vmem:[%s3735_s3 + $0x184] ss:$16 sps:$4 sm:$0xff]  }
  0x39   : > { %739 = vmatpush2.bf16.msra.mxu0 %v2669_v46  ;;  %792 = vmatpush2.bf16.msra.mxu1 %v2670_v47  ;;  %v2761_v46 = vld [vmem:[%s3735_s3 + $0x1a0] ss:$16 sps:$4 sm:$0xff]  }
  0x3a   : > { %740 = vmatprep.subr.bf16.mxu0 %v2671_v49  ;;  %793 = vmatprep.subr.bf16.mxu1 %v2673_v50  ;;  %v2764_v47 = vld [vmem:[%s3735_s3 + $0x3a0] ss:$16 sps:$4 sm:$0xff]   ;;  %v2772_v49 = vld [vmem:[%s3735_s3 + $0x384] ss:$16 sps:$4 sm:$0xff]  }
  0x3b   : > { %v2767_v50 = vld [vmem:[%s3735_s3 + $0x180] ss:$16 sps:$4 sm:$0xff]  }
  0x3d   : > { %741 = vmatpush2.bf16.msra.mxu0 %v2675_v51  ;;  %794 = vmatpush2.bf16.msra.mxu1 %v2676_v52  ;;  %v2770_v51 = vld [vmem:[%s3735_s3 + $0x380] ss:$16 sps:$4 sm:$0xff]   ;;  %v2775_v52 = vld [vmem:[%s3735_s3 + $0x164] ss:$16 sps:$4 sm:$0xff]  }
  0x3e   : > { %742 = vmatprep.subr.bf16.mxu0 %v2677_v53  ;;  %795 = vmatprep.subr.bf16.mxu1 %v2679_v54  ;;  %v2778_v53 = vld [vmem:[%s3735_s3 + $0x364] ss:$16 sps:$4 sm:$0xff]   ;;  %v2773_v54 = vld [vmem:[%s3735_s3 + $0x160] ss:$16 sps:$4 sm:$0xff]  }
  0x41   : > { %743 = vmatpush2.bf16.msra.mxu0 %v2681_v55  ;;  %796 = vmatpush2.bf16.msra.mxu1 %v2682_v56  ;;  %v2776_v55 = vld [vmem:[%s3735_s3 + $0x360] ss:$16 sps:$4 sm:$0xff]   ;;  %v2781_v56 = vld [vmem:[%s3735_s3 + $0x144] ss:$16 sps:$4 sm:$0xff]  }
  0x42   : > { %744 = vmatprep.subr.bf16.mxu0 %v2683_v57  ;;  %797 = vmatprep.subr.bf16.mxu1 %v2685_v58  ;;  %v2784_v57 = vld [vmem:[%s3735_s3 + $0x344] ss:$16 sps:$4 sm:$0xff]   ;;  %v2779_v58 = vld [vmem:[%s3735_s3 + $0x140] ss:$16 sps:$4 sm:$0xff]  }
  0x45   : > { %745 = vmatpush2.bf16.msra.mxu0 %v2687_v59  ;;  %798 = vmatpush2.bf16.msra.mxu1 %v2688_v60  ;;  %v2782_v59 = vld [vmem:[%s3735_s3 + $0x340] ss:$16 sps:$4 sm:$0xff]   ;;  %v2787_v60 = vld [vmem:[%s3735_s3 + $0x124] ss:$16 sps:$4 sm:$0xff]  }
  0x46   : > { %746 = vmatprep.subr.bf16.mxu0 %v2689_v61  ;;  %799 = vmatprep.subr.bf16.mxu1 %v2691_v62  ;;  %v2790_v61 = vld [vmem:[%s3735_s3 + $0x324] ss:$16 sps:$4 sm:$0xff]   ;;  %v2785_v62 = vld [vmem:[%s3735_s3 + $0x120] ss:$16 sps:$4 sm:$0xff]  }
  0x49   : > { %747 = vmatpush2.bf16.msra.mxu0 %v2693_v63  ;;  %800 = vmatpush2.bf16.msra.mxu1 %v2694_v0  ;;  %v2788_v63 = vld [vmem:[%s3735_s3 + $0x320] ss:$16 sps:$4 sm:$0xff]   ;;  %v2793_v0 = vld [vmem:[%s3735_s3 + $0x104] ss:$16 sps:$4 sm:$0xff]  }
  0x4a   : > { %1636 = vmatprep.subr.bf16.mxu0 %v2703_v1  ;;  %1689 = vmatprep.subr.bf16.mxu1 %v2706_v2  ;;  %v2796_v1 = vld [vmem:[%s3735_s3 + $0x304] ss:$16 sps:$4 sm:$0xff]   ;;  %v2791_v2 = vld [vmem:[%s3735_s3 + $0x100] ss:$16 sps:$4 sm:$0xff]  }
  0x4c   : > { %749 = vmatmul.mubr.bf16.vlgmr.msra.gmra.mxu0 %v2695_v3  ;;  %802 = vmatmul.mubr.bf16.vlgmr.msra.gmra.mxu1 %v2695_v3  ;;  %v2794_v3 = vld [vmem:[%s3735_s3 + $0x300] ss:$16 sps:$4 sm:$0xff]  }
  0x4d   : > { %758 = vmatprep.mubr.bf16.mxu0 %v2698_v4  ;;  %811 = vmatprep.mubr.bf16.mxu1 %v2698_v4  ;;  %v2799_v4 = vld [vmem:[%s3735_s3 + $0xec] ss:$16 sps:$4 sm:$0xff]  }
  0x4e   : > { %1637 = vmatpush1.bf16.msra.mxu0 %v2701_v5  ;;  %1690 = vmatpush1.bf16.msra.mxu1 %v2704_v6  ;;  %v2802_v5 = vld [vmem:[%s3735_s3 + $0x2ec] ss:$16 sps:$4 sm:$0xff]   ;;  %v356_v6 = vlaneseq }
  0x4f   : > { %1638 = vmatprep.subr.bf16.mxu0 %v2709_v7  ;;  %1691 = vmatprep.subr.bf16.mxu1 %v2712_v8 }
  0x50   : > { %v3387_v7 = vshrl.u32 %v356_v6, 7 }
  0x52   : > { %1639 = vmatpush1.bf16.msra.mxu0 %v2707_v9  ;;  %1692 = vmatpush1.bf16.msra.mxu1 %v2710_v10  ;;  %v362_v8 = vsub.s32 1, %v3387_v7  ;;  %v370_v9 = vsub.s32 3, %v3387_v7  ;;  %v358_v10 = vsub.s32 0, %v3387_v7 }
  0x53   : > { %1640 = vmatprep.subr.bf16.mxu0 %v2715_v11  ;;  %1693 = vmatprep.subr.bf16.mxu1 %v2718_v12  ;;  %v366_v11 = vsub.s32 2, %v3387_v7  ;;  %v354_v12 = vld [vmem:[%s3734_s2] sm:$0xf] }
  0x54   : > { %759 = vmatmul.mubr.bf16.gmra.mxu0 %v2700_v13  ;;  %812 = vmatmul.mubr.bf16.gmra.mxu1 %v2700_v13 }
  0x56   : > { %1641 = vmatpush1.bf16.msra.mxu0 %v2713_v14  ;;  %1694 = vmatpush1.bf16.msra.mxu1 %v2716_v15  ;;  %v363_v15 = vrot.slane %v354_v12, %v362_v8 }
  0x57   : > { %1642 = vmatprep.subr.bf16.mxu0 %v2721_v16  ;;  %1695 = vmatprep.subr.bf16.mxu1 %v2724_v17  ;;  %v371_v16 = vrot.slane %v354_v12, %v370_v9  ;;  %v359_v17 = vrot.slane %v354_v12, %v358_v10 }
  0x5a   : > { %1643 = vmatpush1.bf16.msra.mxu0 %v2719_v18  ;;  %1696 = vmatpush1.bf16.msra.mxu1 %v2722_v19  ;;  %v367_v18 = vrot.slane %v354_v12, %v366_v11  ;;  %v2803_v12 = vld [vmem:[%s3735_s3 + $0xc8] ss:$16 sps:$4 sm:$0xff]  }
  0x5b   : > { %1644 = vmatprep.subr.bf16.mxu0 %v2727_v20  ;;  %1697 = vmatprep.subr.bf16.mxu1 %v2730_v21 }
  0x5e   : > { %1645 = vmatpush1.bf16.msra.mxu0 %v2725_v22  ;;  %1698 = vmatpush1.bf16.msra.mxu1 %v2728_v23 }
  0x5f   : > { %1646 = vmatprep.subr.bf16.mxu0 %v2733_v24  ;;  %1699 = vmatprep.subr.bf16.mxu1 %v2736_v25 }
  0x62   : > { %1647 = vmatpush1.bf16.msra.mxu0 %v2731_v26  ;;  %1700 = vmatpush1.bf16.msra.mxu1 %v2734_v27 }
  0x63   : > { %1648 = vmatprep.subr.bf16.mxu0 %v2739_v28  ;;  %1701 = vmatprep.subr.bf16.mxu1 %v2742_v29 }
  0x66   : > { %1649 = vmatpush1.bf16.msra.mxu0 %v2737_v30  ;;  %1702 = vmatpush1.bf16.msra.mxu1 %v2740_v31 }
  0x67   : > { %1650 = vmatprep.subr.bf16.mxu0 %v2745_v32  ;;  %1703 = vmatprep.subr.bf16.mxu1 %v2748_v33 }
  0x6a   : > { %1651 = vmatpush1.bf16.msra.mxu0 %v2743_v34  ;;  %1704 = vmatpush1.bf16.msra.mxu1 %v2746_v35 }
  0x6b   : > { %1652 = vmatprep.subr.bf16.mxu0 %v2751_v36  ;;  %1705 = vmatprep.subr.bf16.mxu1 %v2754_v37 }
  0x6e   : > { %1653 = vmatpush2.bf16.msra.mxu0 %v2749_v38  ;;  %1706 = vmatpush2.bf16.msra.mxu1 %v2752_v39 }
  0x6f   : > { %1654 = vmatprep.subr.bf16.mxu0 %v2757_v40  ;;  %1707 = vmatprep.subr.bf16.mxu1 %v2760_v41 }
  0x72   : > { %1655 = vmatpush2.bf16.msra.mxu0 %v2755_v42  ;;  %1708 = vmatpush2.bf16.msra.mxu1 %v2758_v43 }
  0x73   : > { %1656 = vmatprep.subr.bf16.mxu0 %v2763_v44  ;;  %1709 = vmatprep.subr.bf16.mxu1 %v2766_v45 }
  0x76   : > { %1657 = vmatpush2.bf16.msra.mxu0 %v2761_v46  ;;  %1710 = vmatpush2.bf16.msra.mxu1 %v2764_v47 }
  0x77   : > { %1658 = vmatprep.subr.bf16.mxu0 %v2769_v48  ;;  %1711 = vmatprep.subr.bf16.mxu1 %v2772_v49 }
  0x7a   : > { %1659 = vmatpush2.bf16.msra.mxu0 %v2767_v50  ;;  %1712 = vmatpush2.bf16.msra.mxu1 %v2770_v51  ;;  %v2797_v51 = vld [vmem:[%s3735_s3 + $0xe8] ss:$16 sps:$4 sm:$0xff]  }
  0x7b   : > { %1660 = vmatprep.subr.bf16.mxu0 %v2775_v52  ;;  %1713 = vmatprep.subr.bf16.mxu1 %v2778_v53  ;;  %v2800_v52 = vld [vmem:[%s3735_s3 + $0x2e8] ss:$16 sps:$4 sm:$0xff]  }
  0x7e   : > { %1661 = vmatpush2.bf16.msra.mxu0 %v2773_v54  ;;  %1714 = vmatpush2.bf16.msra.mxu1 %v2776_v55 }
  0x7f   : > { %1662 = vmatprep.subr.bf16.mxu0 %v2781_v56  ;;  %1715 = vmatprep.subr.bf16.mxu1 %v2784_v57  ;;  %v2805_v57 = vld [vmem:[%s3735_s3 + $0xcc] ss:$16 sps:$4 sm:$0xff]  }
  0x82   : > { %1663 = vmatpush2.bf16.msra.mxu0 %v2779_v58  ;;  %1716 = vmatpush2.bf16.msra.mxu1 %v2782_v59  ;;  %v2808_v58 = vld [vmem:[%s3735_s3 + $0x2cc] ss:$16 sps:$4 sm:$0xff]  }
  0x83   : > { %1664 = vmatprep.subr.bf16.mxu0 %v2787_v60  ;;  %1717 = vmatprep.subr.bf16.mxu1 %v2790_v61 }
  0x86   : > { %1665 = vmatpush2.bf16.msra.mxu0 %v2785_v62  ;;  %1718 = vmatpush2.bf16.msra.mxu1 %v2788_v63 }
  0x87   : > { %1666 = vmatprep.subr.bf16.mxu0 %v2793_v0  ;;  %1719 = vmatprep.subr.bf16.mxu1 %v2796_v1 }
  0x8a   : > { %1667 = vmatpush2.bf16.msra.mxu0 %v2791_v2  ;;  %1720 = vmatpush2.bf16.msra.mxu1 %v2794_v3 }
  0x8b   : > { %1742 = vmatprep.subr.bf16.mxu0 %v2799_v4  ;;  %1795 = vmatprep.subr.bf16.mxu1 %v2802_v5 }
 0x10c   : > { %v750_v13 = vpop.f32.mrf.mxu0  ;;  %v803_v14 = vpop.f32.mrf.mxu1 }
 0x10d   : > { %v751_v27 = vadd.f32 %v750_v13, %v359_v17  ;;  %v804_v28 = vadd.f32 %v803_v14, %v367_v18  ;;  %v2806_v13 = vld [vmem:[%s3735_s3 + $0x2c8] ss:$16 sps:$4 sm:$0xff]   ;;  %v2811_v14 = vld [vmem:[%s3735_s3 + $0xac] ss:$16 sps:$4 sm:$0xff]  }
 0x10e   : > { %v752_v19 = vpop.f32.mrf.mxu0  ;;  %v805_v20 = vpop.f32.mrf.mxu1 }
 0x10f   : > { %v753_v23 = vadd.f32 %v752_v19, %v363_v15  ;;  %v806_v24 = vadd.f32 %v805_v20, %v371_v16  ;;  %v822_v41 = vmax.f32 %v751_v27, 0.0  ;;  %v824_v42 = vmax.f32 %v804_v28, 0.0  ;;  %v2818_v27 = vld [vmem:[%s3735_s3 + $0x288] ss:$16 sps:$4 sm:$0xff]   ;;  %v2823_v28 = vld [vmem:[%s3735_s3 + $0x6c] ss:$16 sps:$4 sm:$0xff]  }
 0x110   : > { %v754_v21 = vpop.f32.mrf.mxu0  ;;  %v807_v22 = vpop.f32.mrf.mxu1 }
 0x111   : > { %v755_v25 = vadd.f32 %v754_v21, %v359_v17  ;;  %v808_v26 = vadd.f32 %v807_v22, %v367_v18  ;;  %v823_v37 = vmax.f32 %v753_v23, 0.0  ;;  %v825_v38 = vmax.f32 %v806_v24, 0.0  ;;  %v2809_v22 = vld [vmem:[%s3735_s3 + $0xa8] ss:$16 sps:$4 sm:$0xff]   ;;  %v2817_v24 = vld [vmem:[%s3735_s3 + $0x8c] ss:$16 sps:$4 sm:$0xff]  }
 0x112   : > { %v756_v29 = vpop.f32.mrf.mxu0  ;;  %v809_v30 = vpop.f32.mrf.mxu1  ;;  %v2812_v23 = vld [vmem:[%s3735_s3 + $0x2a8] ss:$16 sps:$4 sm:$0xff]  }
 0x113   : > { %v757_v31 = vadd.f32 %v756_v29, %v363_v15  ;;  %v810_v32 = vadd.f32 %v809_v30, %v371_v16  ;;  %v826_v33 = vmax.f32 %v755_v25, 0.0  ;;  %v828_v34 = vmax.f32 %v808_v26, 0.0  ;;  %v2820_v25 = vld [vmem:[%s3735_s3 + $0x28c] ss:$16 sps:$4 sm:$0xff]   ;;  %v2815_v26 = vld [vmem:[%s3735_s3 + $0x88] ss:$16 sps:$4 sm:$0xff]  }
 0x114   : > { %v760_v35 = vpop.f32.mrf.mxu0  ;;  %v813_v36 = vpop.f32.mrf.mxu1  ;;  %v2826_v29 = vld [vmem:[%s3735_s3 + $0x26c] ss:$16 sps:$4 sm:$0xff]   ;;  %v2821_v30 = vld [vmem:[%s3735_s3 + $0x68] ss:$16 sps:$4 sm:$0xff]  }
 0x115   : > { %v827_v39 = vmax.f32 %v757_v31, 0.0  ;;  %v829_v40 = vmax.f32 %v810_v32, 0.0  ;;  %v761_v43 = vadd.f32 %v760_v35, %v359_v17  ;;  %v814_v44 = vadd.f32 %v813_v36, %v367_v18  ;;  %v2824_v31 = vld [vmem:[%s3735_s3 + $0x268] ss:$16 sps:$4 sm:$0xff]   ;;  %v2829_v32 = vld [vmem:[%s3735_s3 + $0x4c] ss:$16 sps:$4 sm:$0xff]  }
 0x116   : > { %v762_v45 = vpop.f32.mrf.mxu0  ;;  %v815_v46 = vpop.f32.mrf.mxu1  ;;  %v3410_v53 = vpack.c.bf16 %v826_v33, %v822_v41  ;;  %v3412_v54 = vpack.c.bf16 %v828_v34, %v824_v42  ;;  %v2832_v33 = vld [vmem:[%s3735_s3 + $0x24c] ss:$16 sps:$4 sm:$0xff]   ;;  %v2827_v34 = vld [vmem:[%s3735_s3 + $0x48] ss:$16 sps:$4 sm:$0xff]  }
 0x117   : > { %v839_v47 = vpack.c.bf16 %v827_v39, %v823_v37  ;;  %v841_v48 = vpack.c.bf16 %v829_v40, %v825_v38  ;;  %v763_v49 = vadd.f32 %v762_v45, %v363_v15  ;;  %v816_v50 = vadd.f32 %v815_v46, %v371_v16  ;;  %v2830_v35 = vld [vmem:[%s3735_s3 + $0x248] ss:$16 sps:$4 sm:$0xff]   ;;  %v2835_v36 = vld [vmem:[%s3735_s3 + $0x2c] ss:$16 sps:$4 sm:$0xff]  }
 0x118   : > { %v764_v55 = vpop.f32.mrf.mxu0  ;;  %v817_v56 = vpop.f32.mrf.mxu1  ;;  %v830_v61 = vmax.f32 %v761_v43, 0.0  ;;  %v832_v62 = vmax.f32 %v814_v44, 0.0  ;;  %v2838_v37 = vld [vmem:[%s3735_s3 + $0x22c] ss:$16 sps:$4 sm:$0xff]   ;;  %v2833_v38 = vld [vmem:[%s3735_s3 + $0x28] ss:$16 sps:$4 sm:$0xff]  }
 0x119   : > { %v765_v59 = vadd.f32 %v764_v55, %v359_v17  ;;  %v818_v60 = vadd.f32 %v817_v56, %v367_v18  ;;  %1668 = vmatprep.mubr.bf16.mxu0 %v839_v47  ;;  %1721 = vmatprep.mubr.bf16.mxu1 %v841_v48  ;;  %v831_v63 = vmax.f32 %v763_v49, 0.0  ;;  %v833_v0 = vmax.f32 %v816_v50, 0.0  ;;  %v2836_v39 = vld [vmem:[%s3735_s3 + $0x228] ss:$16 sps:$4 sm:$0xff]   ;;  %v2841_v40 = vld [vmem:[%s3735_s3 + $0xc] ss:$16 sps:$4 sm:$0xff]  }
 0x11a   : > { %v766_v1 = vpop.f32.mrf.mxu0  ;;  %v819_v2 = vpop.f32.mrf.mxu1  ;;  %1669 = vmatmul.mubr.bf16.vlgmr.msra.gmra.mxu0 %v3410_v53  ;;  %1722 = vmatmul.mubr.bf16.vlgmr.msra.gmra.mxu1 %v3412_v54  ;;  %v2844_v41 = vld [vmem:[%s3735_s3 + $0x20c] ss:$16 sps:$4 sm:$0xff]   ;;  %v2839_v42 = vld [vmem:[%s3735_s3 + $0x8] ss:$16 sps:$4 sm:$0xff]  }
 0x11b   : > { %v834_v3 = vmax.f32 %v765_v59, 0.0  ;;  %v836_v4 = vmax.f32 %v818_v60, 0.0  ;;  %v767_v5 = vadd.f32 %v766_v1, %v363_v15  ;;  %v820_v6 = vadd.f32 %v819_v2, %v371_v16  ;;  %1743 = vmatpush1.bf16.msra.mxu0 %v2797_v51  ;;  %1796 = vmatpush1.bf16.msra.mxu1 %v2800_v52  ;;  %v2814_v15 = vld [vmem:[%s3735_s3 + $0x2ac] ss:$16 sps:$4 sm:$0xff]   ;;  %v2842_v43 = vld [vmem:[%s3735_s3 + $0x208] ss:$16 sps:$4 sm:$0xff]  }
 0x11c   : > { %1744 = vmatprep.subr.bf16.mxu0 %v2805_v57  ;;  %1797 = vmatprep.subr.bf16.mxu1 %v2808_v58  ;;  %v2847_v44 = vld [vmem:[%s3735_s3 + $0x1ec] ss:$16 sps:$4 sm:$0xff]   ;;  %v2845_v46 = vld [vmem:[%s3735_s3 + $0x1e8] ss:$16 sps:$4 sm:$0xff]  }
 0x11d   : > { %v835_v16 = vmax.f32 %v767_v5, 0.0  ;;  %v837_v17 = vmax.f32 %v820_v6, 0.0  ;;  %v3434_v18 = vpack.c.bf16 %v834_v3, %v830_v61  ;;  %v3436_v19 = vpack.c.bf16 %v836_v4, %v832_v62  ;;  %v2850_v45 = vld [vmem:[%s3735_s3 + $0x3ec] ss:$16 sps:$4 sm:$0xff]   ;;  %v2851_v50 = vld [vmem:[%s3735_s3 + $0x1c8] ss:$16 sps:$4 sm:$0xff]  }
 0x11e   : > { %v2856_v49 = vld [vmem:[%s3735_s3 + $0x3cc] ss:$16 sps:$4 sm:$0xff]   ;;  %v2854_v51 = vld [vmem:[%s3735_s3 + $0x3c8] ss:$16 sps:$4 sm:$0xff]  }
 0x11f   : > { %v3438_v20 = vpack.c.bf16 %v835_v16, %v831_v63  ;;  %v3440_v21 = vpack.c.bf16 %v837_v17, %v833_v0  ;;  %1745 = vmatpush1.bf16.msra.mxu0 %v2803_v12  ;;  %1798 = vmatpush1.bf16.msra.mxu1 %v2806_v13  ;;  %v2859_v52 = vld [vmem:[%s3735_s3 + $0x1ac] ss:$16 sps:$4 sm:$0xff]   ;;  %v2857_v56 = vld [vmem:[%s3735_s3 + $0x1a8] ss:$16 sps:$4 sm:$0xff]  }
 0x120   : > { %1746 = vmatprep.subr.bf16.mxu0 %v2811_v14  ;;  %1799 = vmatprep.subr.bf16.mxu1 %v2814_v15  ;;  %v2862_v55 = vld [vmem:[%s3735_s3 + $0x3ac] ss:$16 sps:$4 sm:$0xff]   ;;  %v2860_v57 = vld [vmem:[%s3735_s3 + $0x3a8] ss:$16 sps:$4 sm:$0xff]  }
 0x121   : > { %1678 = vmatprep.mubr.bf16.mxu0 %v3438_v20  ;;  %1731 = vmatprep.mubr.bf16.mxu1 %v3440_v21  ;;  %v2865_v58 = vld [vmem:[%s3735_s3 + $0x18c] ss:$16 sps:$4 sm:$0xff]   ;;  %v2863_v60 = vld [vmem:[%s3735_s3 + $0x188] ss:$16 sps:$4 sm:$0xff]  }
 0x122   : > { %1679 = vmatmul.mubr.bf16.gmra.mxu0 %v3434_v18  ;;  %1732 = vmatmul.mubr.bf16.gmra.mxu1 %v3436_v19  ;;  %v2868_v59 = vld [vmem:[%s3735_s3 + $0x38c] ss:$16 sps:$4 sm:$0xff]   ;;  %v2866_v61 = vld [vmem:[%s3735_s3 + $0x388] ss:$16 sps:$4 sm:$0xff]  }
 0x123   : > { %1747 = vmatpush1.bf16.msra.mxu0 %v2809_v22  ;;  %1800 = vmatpush1.bf16.msra.mxu1 %v2812_v23  ;;  %v2871_v62 = vld [vmem:[%s3735_s3 + $0x16c] ss:$16 sps:$4 sm:$0xff]   ;;  %v2869_v0 = vld [vmem:[%s3735_s3 + $0x168] ss:$16 sps:$4 sm:$0xff]  }
 0x124   : > { %1774 = vmatprep.mubr.bf16.mxu0 %v839_v47  ;;  %1827 = vmatprep.mubr.bf16.mxu1 %v841_v48  ;;  %v2848_v47 = vld [vmem:[%s3735_s3 + $0x3e8] ss:$16 sps:$4 sm:$0xff]   ;;  %v2853_v48 = vld [vmem:[%s3735_s3 + $0x1cc] ss:$16 sps:$4 sm:$0xff]  }
 0x125   : > { %1748 = vmatprep.subr.bf16.mxu0 %v2817_v24  ;;  %1801 = vmatprep.subr.bf16.mxu1 %v2820_v25  ;;  %v2874_v63 = vld [vmem:[%s3735_s3 + $0x36c] ss:$16 sps:$4 sm:$0xff]   ;;  %v2872_v1 = vld [vmem:[%s3735_s3 + $0x368] ss:$16 sps:$4 sm:$0xff]   ;;  %v2895_v25 = vld [vmem:[%s3737_s5 + $0x70] sm:$0xff]  }
 0x126   : > { %v2877_v2 = vld [vmem:[%s3735_s3 + $0x14c] ss:$16 sps:$4 sm:$0xff]   ;;  %v2875_v4 = vld [vmem:[%s3735_s3 + $0x148] ss:$16 sps:$4 sm:$0xff]  }
 0x127   : > { %1749 = vmatpush1.bf16.msra.mxu0 %v2815_v26  ;;  %1802 = vmatpush1.bf16.msra.mxu1 %v2818_v27  ;;  %v2880_v3 = vld [vmem:[%s3735_s3 + $0x34c] ss:$16 sps:$4 sm:$0xff]   ;;  %v2878_v5 = vld [vmem:[%s3735_s3 + $0x348] ss:$16 sps:$4 sm:$0xff]   ;;  %v2896_v26 = vld [vmem:[%s3737_s5 + $0x30] sm:$0xff]  }
 0x128   : > { %1750 = vmatprep.subr.bf16.mxu0 %v2823_v28  ;;  %1803 = vmatprep.subr.bf16.mxu1 %v2826_v29  ;;  %v2883_v6 = vld [vmem:[%s3735_s3 + $0x12c] ss:$16 sps:$4 sm:$0xff]   ;;  %v2881_v13 = vld [vmem:[%s3735_s3 + $0x128] ss:$16 sps:$4 sm:$0xff]  }
 0x129   : > { %v2886_v12 = vld [vmem:[%s3735_s3 + $0x32c] ss:$16 sps:$4 sm:$0xff]   ;;  %v2884_v14 = vld [vmem:[%s3735_s3 + $0x328] ss:$16 sps:$4 sm:$0xff]  }
 0x12a   : > { %v2889_v15 = vld [vmem:[%s3735_s3 + $0x10c] ss:$16 sps:$4 sm:$0xff]   ;;  %v2887_v17 = vld [vmem:[%s3735_s3 + $0x108] ss:$16 sps:$4 sm:$0xff]  }
 0x12b   : > { %1751 = vmatpush1.bf16.msra.mxu0 %v2821_v30  ;;  %1804 = vmatpush1.bf16.msra.mxu1 %v2824_v31  ;;  %v2892_v16 = vld [vmem:[%s3735_s3 + $0x30c] ss:$16 sps:$4 sm:$0xff]   ;;  %v2890_v22 = vld [vmem:[%s3735_s3 + $0x308] ss:$16 sps:$4 sm:$0xff]  }
 0x12c   : > { %1752 = vmatprep.subr.bf16.mxu0 %v2829_v32  ;;  %1805 = vmatprep.subr.bf16.mxu1 %v2832_v33  ;;  %v2893_v23 = vld [vmem:[%s3737_s5 + $0x78] sm:$0xff]   ;;  %v2897_v27 = vld [vmem:[%s3737_s5 + $0x68] sm:$0xff]   ;;  %v2907_v33 = vld [vmem:[%s3737_s5 + $0x40] sm:$0xff]  }
 0x12d   : > { %v2894_v24 = vld [vmem:[%s3737_s5 + $0x38] sm:$0xff]   ;;  %v2905_v29 = vld [vmem:[%s3737_s5 + $0x48] sm:$0xff]  }
 0x12e   : > { %v2902_v28 = vld [vmem:[%s3737_s5 + $0x18] sm:$0xff]   ;;  %v2906_v32 = vld [vmem:[%s3737_s5 + $0x8] sm:$0xff]  }
 0x12f   : > { %1753 = vmatpush1.bf16.msra.mxu0 %v2827_v34  ;;  %1806 = vmatpush1.bf16.msra.mxu1 %v2830_v35  ;;  %v2909_v30 = vld [vmem:[%s3737_s5 + $0xf8] sm:$0xff]   ;;  %v2911_v34 = vld [vmem:[%s3737_s5 + $0xf0] sm:$0xff]  }
 0x130   : > { %1754 = vmatprep.subr.bf16.mxu0 %v2835_v36  ;;  %1807 = vmatprep.subr.bf16.mxu1 %v2838_v37  ;;  %v2910_v31 = vld [vmem:[%s3737_s5 + $0xb8] sm:$0xff]   ;;  %v2912_v35 = vld [vmem:[%s3737_s5 + $0xb0] sm:$0xff]   ;;  %v2913_v36 = vld [vmem:[%s3737_s5 + $0xe8] sm:$0xff]  }
 0x131   : > { %v2908_v37 = vld [vmem:[%s3737_s5] sm:$0xff]  }
 0x133   : > { %1755 = vmatpush1.bf16.msra.mxu0 %v2833_v38  ;;  %1808 = vmatpush1.bf16.msra.mxu1 %v2836_v39  ;;  %v2914_v38 = vld [vmem:[%s3737_s5 + $0xa8] sm:$0xff]   ;;  %v2915_v39 = vld [vmem:[%s3737_s5 + $0xe0] sm:$0xff]  }
 0x134   : > { %1756 = vmatprep.subr.bf16.mxu0 %v2841_v40  ;;  %1809 = vmatprep.subr.bf16.mxu1 %v2844_v41  ;;  %v2916_v40 = vld [vmem:[%s3737_s5 + $0xa0] sm:$0xff]   ;;  %v2917_v41 = vld [vmem:[%s3737_s5 + $0xd8] sm:$0xff]  }
 0x137   : > { %1757 = vmatpush1.bf16.msra.mxu0 %v2839_v42  ;;  %1810 = vmatpush1.bf16.msra.mxu1 %v2842_v43  ;;  %v2918_v42 = vld [vmem:[%s3737_s5 + $0x98] sm:$0xff]   ;;  %v2919_v43 = vld [vmem:[%s3737_s5 + $0xd0] sm:$0xff]  }
 0x138   : > { %1758 = vmatprep.subr.bf16.mxu0 %v2847_v44  ;;  %1811 = vmatprep.subr.bf16.mxu1 %v2850_v45  ;;  %v2920_v44 = vld [vmem:[%s3737_s5 + $0x90] sm:$0xff]   ;;  %v2921_v45 = vld [vmem:[%s3737_s5 + $0xc8] sm:$0xff]  }
 0x13b   : > { %1759 = vmatpush2.bf16.msra.mxu0 %v2845_v46  ;;  %1812 = vmatpush2.bf16.msra.mxu1 %v2848_v47  ;;  %v2922_v46 = vld [vmem:[%s3737_s5 + $0x88] sm:$0xff]   ;;  %v2923_v47 = vld [vmem:[%s3737_s5 + $0xc0] sm:$0xff]  }
 0x13c   : > { %1760 = vmatprep.subr.bf16.mxu0 %v2853_v48  ;;  %1813 = vmatprep.subr.bf16.mxu1 %v2856_v49  ;;  %v2924_v48 = vld [vmem:[%s3737_s5 + $0x80] sm:$0xff]  }
 0x13d   : > { %v974_v49 = vld [vmem:[%s3736_s4] sm:$0xf] }
 0x13f   : > { %1761 = vmatpush2.bf16.msra.mxu0 %v2851_v50  ;;  %1814 = vmatpush2.bf16.msra.mxu1 %v2854_v51  ;;  %v983_v50 = vrot.slane %v974_v49, %v362_v8  ;;  %v979_v51 = vrot.slane %v974_v49, %v358_v10 }
 0x140   : > { %1762 = vmatprep.subr.bf16.mxu0 %v2859_v52  ;;  %1815 = vmatprep.subr.bf16.mxu1 %v2862_v55 }
 0x143   : > { %1763 = vmatpush2.bf16.msra.mxu0 %v2857_v56  ;;  %1816 = vmatpush2.bf16.msra.mxu1 %v2860_v57 }
 0x144   : > { %1764 = vmatprep.subr.bf16.mxu0 %v2865_v58  ;;  %1817 = vmatprep.subr.bf16.mxu1 %v2868_v59 }
 0x147   : > { %1765 = vmatpush2.bf16.msra.mxu0 %v2863_v60  ;;  %1818 = vmatpush2.bf16.msra.mxu1 %v2866_v61 }
 0x148   : > { %1766 = vmatprep.subr.bf16.mxu0 %v2871_v62  ;;  %1819 = vmatprep.subr.bf16.mxu1 %v2874_v63 }
 0x14b   : > { %1767 = vmatpush2.bf16.msra.mxu0 %v2869_v0  ;;  %1820 = vmatpush2.bf16.msra.mxu1 %v2872_v1 }
 0x14c   : > { %1768 = vmatprep.subr.bf16.mxu0 %v2877_v2  ;;  %1821 = vmatprep.subr.bf16.mxu1 %v2880_v3 }
 0x14f   : > { %1769 = vmatpush2.bf16.msra.mxu0 %v2875_v4  ;;  %1822 = vmatpush2.bf16.msra.mxu1 %v2878_v5 }
 0x150   : > { %1770 = vmatprep.subr.bf16.mxu0 %v2883_v6  ;;  %1823 = vmatprep.subr.bf16.mxu1 %v2886_v12 }
 0x153   : > { %1771 = vmatpush2.bf16.msra.mxu0 %v2881_v13  ;;  %1824 = vmatpush2.bf16.msra.mxu1 %v2884_v14 }
 0x154   : > { %1772 = vmatprep.subr.bf16.mxu0 %v2889_v15  ;;  %1825 = vmatprep.subr.bf16.mxu1 %v2892_v16 }
 0x157   : > { %1773 = vmatpush2.bf16.msra.mxu0 %v2887_v17  ;;  %1826 = vmatpush2.bf16.msra.mxu1 %v2890_v22 }
 0x158   : > { %2535 = vmatprep.subr.bf16.mxu0 %v2893_v23  ;;  %2563 = vmatprep.subr.bf16.mxu1 %v2909_v30 }
 0x15a   : > { %1775 = vmatmul.mubr.bf16.vlgmr.msra.gmra.mxu0 %v3410_v53  ;;  %1828 = vmatmul.mubr.bf16.vlgmr.msra.gmra.mxu1 %v3412_v54  ;;  %v2898_v53 = vld [vmem:[%s3737_s5 + $0x28] sm:$0xff]   ;;  %v2899_v54 = vld [vmem:[%s3737_s5 + $0x60] sm:$0xff]  }
 0x15b   : > { %1784 = vmatprep.mubr.bf16.mxu0 %v3438_v20  ;;  %1837 = vmatprep.mubr.bf16.mxu1 %v3440_v21  ;;  %v2900_v20 = vld [vmem:[%s3737_s5 + $0x20] sm:$0xff]   ;;  %v2901_v21 = vld [vmem:[%s3737_s5 + $0x58] sm:$0xff]  }
 0x15c   : > { %2536 = vmatpush3.bf16.msra.mxu0 %v2894_v24  ;;  %2564 = vmatpush3.bf16.msra.mxu1 %v2910_v31 }
 0x15d   : > { %2537 = vmatprep.subr.bf16.mxu0 %v2895_v25  ;;  %2565 = vmatprep.subr.bf16.mxu1 %v2911_v34 }
 0x160   : > { %2538 = vmatpush3.bf16.msra.mxu0 %v2896_v26  ;;  %2566 = vmatpush3.bf16.msra.mxu1 %v2912_v35  ;;  %v991_v35 = vrot.slane %v974_v49, %v370_v9 }
 0x161   : > { %2539 = vmatprep.subr.bf16.mxu0 %v2897_v27  ;;  %2567 = vmatprep.subr.bf16.mxu1 %v2913_v36  ;;  %v987_v36 = vrot.slane %v974_v49, %v366_v11 }
 0x162   : > { %1785 = vmatmul.mubr.bf16.gmra.mxu0 %v3434_v18  ;;  %1838 = vmatmul.mubr.bf16.gmra.mxu1 %v3436_v19  ;;  %v2903_v18 = vld [vmem:[%s3737_s5 + $0x50] sm:$0xff]  }
 0x163   : > { %v2904_v19 = vld [vmem:[%s3737_s5 + $0x10] sm:$0xff]  }
 0x164   : > { %2540 = vmatpush3.bf16.msra.mxu0 %v2898_v53  ;;  %2568 = vmatpush3.bf16.msra.mxu1 %v2914_v38 }
 0x165   : > { %2541 = vmatprep.subr.bf16.mxu0 %v2899_v54  ;;  %2569 = vmatprep.subr.bf16.mxu1 %v2915_v39 }
 0x168   : > { %2542 = vmatpush3.bf16.msra.mxu0 %v2900_v20  ;;  %2570 = vmatpush3.bf16.msra.mxu1 %v2916_v40 }
 0x169   : > { %2543 = vmatprep.subr.bf16.mxu0 %v2901_v21  ;;  %2571 = vmatprep.subr.bf16.mxu1 %v2917_v41 }
 0x16c   : > { %2544 = vmatpush3.bf16.msra.mxu0 %v2902_v28  ;;  %2572 = vmatpush3.bf16.msra.mxu1 %v2918_v42 }
 0x16d   : > { %2545 = vmatprep.subr.bf16.mxu0 %v2903_v18  ;;  %2573 = vmatprep.subr.bf16.mxu1 %v2919_v43 }
 0x170   : > { %2546 = vmatpush3.bf16.msra.mxu0 %v2904_v19  ;;  %2574 = vmatpush3.bf16.msra.mxu1 %v2920_v44 }
 0x171   : > { %2547 = vmatprep.subr.bf16.mxu0 %v2905_v29  ;;  %2575 = vmatprep.subr.bf16.mxu1 %v2921_v45 }
 0x174   : > { %2548 = vmatpush3.bf16.msra.mxu0 %v2906_v32  ;;  %2576 = vmatpush3.bf16.msra.mxu1 %v2922_v46 }
 0x175   : > { %2549 = vmatprep.subr.bf16.mxu0 %v2907_v33  ;;  %2577 = vmatprep.subr.bf16.mxu1 %v2923_v47 }
 0x178   : > { %2550 = vmatpush3.bf16.msra.mxu0 %v2908_v37  ;;  %2578 = vmatpush3.bf16.msra.mxu1 %v2924_v48 }
 0x1da   : > { %v1670_v52 = vpop.f32.mrf.mxu0  ;;  %v1723_v55 = vpop.f32.mrf.mxu1 }
 0x1db   : > { %v1671_v59 = vadd.f32 %v1670_v52, %v979_v51 }
 0x1dc   : > { %v1672_v56 = vpop.f32.mrf.mxu0  ;;  %v1725_v57 = vpop.f32.mrf.mxu1 }
 0x1dd   : > { %v1673_v58 = vadd.f32 %v1672_v56, %v983_v50  ;;  %v1724_v4 = vadd.f32 %v1723_v55, %v1671_v59 }
 0x1de   : > { %v1674_v60 = vpop.f32.mrf.mxu0  ;;  %v1727_v61 = vpop.f32.mrf.mxu1 }
 0x1df   : > { %v1675_v62 = vadd.f32 %v1674_v60, %v979_v51  ;;  %v1726_v1 = vadd.f32 %v1725_v57, %v1673_v58  ;;  %v1848_v22 = vmax.f32 %v1724_v4, 0.0 }
 0x1e0   : > { %v1676_v63 = vpop.f32.mrf.mxu0  ;;  %v1729_v0 = vpop.f32.mrf.mxu1 }
 0x1e1   : > { %v1728_v2 = vadd.f32 %v1727_v61, %v1675_v62  ;;  %v1677_v3 = vadd.f32 %v1676_v63, %v983_v50  ;;  %v1849_v15 = vmax.f32 %v1726_v1, 0.0 }
 0x1e2   : > { %v1680_v5 = vpop.f32.mrf.mxu0  ;;  %v1733_v8 = vpop.f32.mrf.mxu1 }
 0x1e3   : > { %v1730_v6 = vadd.f32 %v1729_v0, %v1677_v3  ;;  %v1681_v12 = vadd.f32 %v1680_v5, %v979_v51  ;;  %v1852_v10 = vmax.f32 %v1728_v2, 0.0 }
 0x1e4   : > { %v1682_v13 = vpop.f32.mrf.mxu0  ;;  %v1735_v14 = vpop.f32.mrf.mxu1 }
 0x1e5   : > { %v1853_v16 = vmax.f32 %v1730_v6, 0.0  ;;  %v1683_v17 = vadd.f32 %v1682_v13, %v983_v50  ;;  %v1734_v23 = vadd.f32 %v1733_v8, %v1681_v12  ;;  %v1864_v54 = vpack.c.bf16 %v1852_v10, %v1848_v22 }
 0x1e6   : > { %v1684_v24 = vpop.f32.mrf.mxu0  ;;  %v1737_v25 = vpop.f32.mrf.mxu1 }
 0x1e7   : > { %v1865_v26 = vpack.c.bf16 %v1853_v16, %v1849_v15  ;;  %v1685_v27 = vadd.f32 %v1684_v24, %v979_v51  ;;  %v1736_v53 = vadd.f32 %v1735_v14, %v1683_v17  ;;  %v1856_v19 = vmax.f32 %v1734_v23, 0.0 }
 0x1e8   : > { %v1686_v20 = vpop.f32.mrf.mxu0  ;;  %v1739_v21 = vpop.f32.mrf.mxu1 }
 0x1e9   : > { %2167 = vmatprep.mubr.bf16.mxu0 %v1865_v26  ;;  %v1687_v28 = vadd.f32 %v1686_v20, %v983_v50  ;;  %v1738_v18 = vadd.f32 %v1737_v25, %v1685_v27  ;;  %v1857_v29 = vmax.f32 %v1736_v53, 0.0 }
 0x1ea   : > { %2168 = vmatmul.mubr.bf16.vlgmr.msra.gmra.mxu0 %v1864_v54  ;;  %v2499_v54 = vld [vmem:[%s3738_s6] ss:$0 sm:$0xff] }
 0x1eb   : > { %v1860_v30 = vmax.f32 %v1738_v18, 0.0  ;;  %v1740_v31 = vadd.f32 %v1739_v21, %v1687_v28 }
 0x1ed   : > { %v1861_v32 = vmax.f32 %v1740_v31, 0.0  ;;  %v1868_v33 = vpack.c.bf16 %v1860_v30, %v1856_v19 }
 0x1ef   : > { %v1869_v34 = vpack.c.bf16 %v1861_v32, %v1857_v29 }
 0x1f1   : > { %2175 = vmatprep.mubr.bf16.mxu0 %v1869_v34 }
 0x1f2   : > { %2176 = vmatmul.mubr.bf16.gmra.mxu0 %v1868_v33 }
 0x21a   : > { %v1776_v37 = vpop.f32.mrf.mxu0  ;;  %v1829_v38 = vpop.f32.mrf.mxu1 }
 0x21b   : > { %v1777_v42 = vadd.f32 %v1776_v37, %v987_v36 }
 0x21c   : > { %v1778_v39 = vpop.f32.mrf.mxu0  ;;  %v1831_v40 = vpop.f32.mrf.mxu1 }
 0x21d   : > { %v1779_v41 = vadd.f32 %v1778_v39, %v991_v35  ;;  %v1830_v52 = vadd.f32 %v1829_v38, %v1777_v42 }
 0x21e   : > { %v1780_v43 = vpop.f32.mrf.mxu0  ;;  %v1833_v44 = vpop.f32.mrf.mxu1 }
 0x21f   : > { %v1781_v45 = vadd.f32 %v1780_v43, %v987_v36  ;;  %v1832_v48 = vadd.f32 %v1831_v40, %v1779_v41  ;;  %v1850_v60 = vmax.f32 %v1830_v52, 0.0 }
 0x220   : > { %v1782_v46 = vpop.f32.mrf.mxu0  ;;  %v1835_v47 = vpop.f32.mrf.mxu1 }
 0x221   : > { %v1834_v50 = vadd.f32 %v1833_v44, %v1781_v45  ;;  %v1783_v51 = vadd.f32 %v1782_v46, %v991_v35  ;;  %v1851_v57 = vmax.f32 %v1832_v48, 0.0 }
 0x222   : > { %v1786_v55 = vpop.f32.mrf.mxu0  ;;  %v1839_v9 = vpop.f32.mrf.mxu1 }
 0x223   : > { %v1836_v56 = vadd.f32 %v1835_v47, %v1783_v51  ;;  %v1854_v7 = vmax.f32 %v1834_v50, 0.0  ;;  %v1787_v61 = vadd.f32 %v1786_v55, %v987_v36 }
 0x224   : > { %v1788_v11 = vpop.f32.mrf.mxu0  ;;  %v1841_v49 = vpop.f32.mrf.mxu1 }
 0x225   : > { %v1855_v58 = vmax.f32 %v1836_v56, 0.0  ;;  %v1789_v59 = vadd.f32 %v1788_v11, %v991_v35  ;;  %v1866_v2 = vpack.c.bf16 %v1854_v7, %v1850_v60  ;;  %v1840_v6 = vadd.f32 %v1839_v9, %v1787_v61 }
 0x226   : > { %v1790_v62 = vpop.f32.mrf.mxu0  ;;  %v1843_v63 = vpop.f32.mrf.mxu1 }
 0x227   : > { %v1867_v0 = vpack.c.bf16 %v1855_v58, %v1851_v57  ;;  %v1791_v1 = vadd.f32 %v1790_v62, %v987_v36  ;;  %v1842_v4 = vadd.f32 %v1841_v49, %v1789_v59  ;;  %v1858_v16 = vmax.f32 %v1840_v6, 0.0 }
 0x228   : > { %v1792_v3 = vpop.f32.mrf.mxu0  ;;  %v1845_v12 = vpop.f32.mrf.mxu1 }
 0x229   : > { %v1844_v5 = vadd.f32 %v1843_v63, %v1791_v1  ;;  %v1793_v8 = vadd.f32 %v1792_v3, %v991_v35  ;;  %2216 = vmatprep.mubr.bf16.mxu1 %v1867_v0  ;;  %v1859_v14 = vmax.f32 %v1842_v4, 0.0 }
 0x22a   : > { %2217 = vmatmul.mubr.bf16.vlgmr.msra.gmra.mxu1 %v1866_v2 }
 0x22b   : > { %v1846_v10 = vadd.f32 %v1845_v12, %v1793_v8  ;;  %v1862_v13 = vmax.f32 %v1844_v5, 0.0 }
 0x22d   : > { %v1863_v15 = vmax.f32 %v1846_v10, 0.0  ;;  %v1870_v22 = vpack.c.bf16 %v1862_v13, %v1858_v16 }
 0x22f   : > { %v1871_v17 = vpack.c.bf16 %v1863_v15, %v1859_v14 }
 0x231   : > { %2224 = vmatprep.mubr.bf16.mxu1 %v1871_v17 }
 0x232   : > { %2225 = vmatmul.mubr.bf16.gmra.mxu1 %v1870_v22 }
 0x2aa   : > { %v2551_v23 = vpop.f32.mrf.mxu0 }
 0x2ac   : > { %v2552_v24 = vpop.f32.mrf.mxu0 }
 0x2ad   : > { %v2553_v53 = vadd.f32 %v2552_v24, %v2551_v23 }
 0x2ae   : > { %v2554_v25 = vpop.f32.mrf.mxu0 }
 0x2af   : > { %v2170_v18 = vadd.f32 %v2553_v53, %v2499_v54 }
 0x2b0   : > { %v2555_v26 = vpop.f32.mrf.mxu0 }
 0x2b1   : > { %v2556_v19 = vadd.f32 %v2555_v26, %v2554_v25 }
 0x2b2   : > { %v2557_v27 = vpop.f32.mrf.mxu0 }
 0x2b3   : > { %v2173_v34 = vadd.f32 %v2556_v19, %v2499_v54 }
 0x2b4   : > { %v2558_v20 = vpop.f32.mrf.mxu0 }
 0x2b5   : > { %v2559_v35 = vadd.f32 %v2558_v20, %v2557_v27 }
 0x2b6   : > { %v2560_v30 = vpop.f32.mrf.mxu0 }
 0x2b7   : > { %v2178_v41 = vadd.f32 %v2559_v35, %v2499_v54 }
 0x2b8   : > { %v2561_v37 = vpop.f32.mrf.mxu0 }
 0x2b9   : > { %v2562_v42 = vadd.f32 %v2561_v37, %v2560_v30 }
 0x2bb   : > { %v2181_v47 = vadd.f32 %v2562_v42, %v2499_v54 }
 0x2ea   : > { %v2579_v21 = vpop.f32.mrf.mxu1 }
 0x2ec   : > { %v2580_v28 = vpop.f32.mrf.mxu1 }
 0x2ed   : > { %v2581_v29 = vadd.f32 %v2580_v28, %v2579_v21 }
 0x2ee   : > { %v2582_v31 = vpop.f32.mrf.mxu1 }
 0x2ef   : > { %v2219_v32 = vadd.f32 %v2581_v29, %v2170_v18 }
 0x2f0   : > { %v2583_v33 = vpop.f32.mrf.mxu1 }
 0x2f1   : > { %2233 = vst [vmem:[%s283_s12] sm:$0xff] %v2219_v32  ;;  %v2584_v36 = vadd.f32 %v2583_v33, %v2582_v31 }
 0x2f2   : > { %v2585_v38 = vpop.f32.mrf.mxu1 }
 0x2f3   : > { %v2222_v39 = vadd.f32 %v2584_v36, %v2173_v34 }
 0x2f4   : > { %v2586_v40 = vpop.f32.mrf.mxu1 }
 0x2f5   : > { %2234 = vst [vmem:[%s283_s12 + $0x8] sm:$0xff] %v2222_v39  ;;  %v2587_v43 = vadd.f32 %v2586_v40, %v2585_v38 }
 0x2f6   : > { %v2588_v44 = vpop.f32.mrf.mxu1 }
 0x2f7   : > { %v2227_v45 = vadd.f32 %v2587_v43, %v2178_v41 }
 0x2f8   : > { %v2589_v46 = vpop.f32.mrf.mxu1 }
 0x2f9   : > { %2235 = vst [vmem:[%s283_s12 + $0x10] sm:$0xff] %v2227_v45  ;;  %v2590_v48 = vadd.f32 %v2589_v46, %v2588_v44 }
 0x2fb   : > { %v2230_v50 = vadd.f32 %v2590_v48, %v2181_v47 }
 0x2fd   : > { %2236 = vst [vmem:[%s283_s12 + $0x18] sm:$0xff] %v2230_v50 }
 0x2fe PF: > { %s17_s24 = sadd.s32 1, %s2931_s24  }
 0x2ff   : > { %p14_p4 = scmp.ge.s32.totalorder %s17_s24, 4  }
 0x301   :  { %16 = sbr.rel (!%p14_p4) target bundleno = 1 (0x1), region = 78 }

</bundles_post_ra>
